<compile_context>
chip_gen: v6e
topology: v6e:2x2x1
jax: 0.10.0
libtpu: 0.0.40
codegen_flags: <defaults>
</compile_context>

<pallas_src>
import functools

import jax
import jax.numpy as jnp
from jax.experimental import pallas as pl
from jax.experimental.pallas import tpu as pltpu

BN_EPS = 1e-5
LANE = 128                      # channel padding target (lane width)
SUBLANE = 8
TM_MAX = 512                    # row-tile upper bound (sized for v7x's 64 MiB VMEM w/ double buffering)
VMEM_LIMIT = 48 * 1024 * 1024   # < 64 MiB physical on v7x, generous on v5e/v6e


# ----------------------------- helpers --------------------------------------

def _round_up(x, m):
    return (x + m - 1) // m * m


def _pick_m_tile(m):
    """Row tile TM and padded extent Mp (Mp % TM == 0, TM % 8 == 0)."""
    if m <= TM_MAX:
        tm = _round_up(m, SUBLANE)
        return tm, tm
    return TM_MAX, _round_up(m, TM_MAX)


# ----------------------------- Pallas kernels -------------------------------

def _conv1_stats_kernel(a_ref, w_ref, y_ref, stats_ref, acc_ref):
    # a: [TM, K] bf16, w: [K, C] bf16 -> y: [TM, C] f32 (conv1, bias-free: the
    # per-channel bias is cancelled by the BatchNorm mean subtraction).
    # Per-channel sum / sum-of-squares accumulate across the M grid in VMEM
    # scratch and are written out once on the last step (pl.when).
    step = pl.program_id(0)

    @pl.when(step == 0)
    def _():
        acc_ref[...] = jnp.zeros_like(acc_ref)

    y = jnp.dot(a_ref[...], w_ref[...], preferred_element_type=jnp.float32)
    y_ref[...] = y
    acc_ref[0:1, :] += jnp.sum(y, axis=0, keepdims=True)
    acc_ref[1:2, :] += jnp.sum(y * y, axis=0, keepdims=True)

    @pl.when(step == pl.num_programs(0) - 1)
    def _():
        stats_ref[...] = acc_ref[...]


def _bn_relu_kernel(y_ref, stats_ref, gamma_ref, beta_ref, o_ref, *, count):
    # BatchNorm2d (training batch stats) + affine + ReLU; stats come in as
    # [sum; sumsq] rows. Variance via E[x^2] - E[x]^2 (one pass, no (x-m) temp).
    # `count` is the real (unpadded) number of rows, static at trace time, so
    # padded zero-rows contribute nothing to the statistics.
    inv_count = 1.0 / count
    mean = stats_ref[0:1, :] * inv_count
    var = jnp.maximum(stats_ref[1:2, :] * inv_count - mean * mean, 0.0)
    inv = jax.lax.rsqrt(var + BN_EPS)
    scale = gamma_ref[...] * inv
    shift = beta_ref[...] - mean * scale
    o_ref[...] = jnp.maximum(y_ref[...] * scale + shift, 0.0)


def _conv2_residual_kernel(a_ref, w_ref, b_ref, r_ref, o_ref):
    # a: [TM, K] bf16, w: [K, C] bf16, b: [1, C] f32, r: [TM, C] f32
    o_ref[...] = (
        jnp.dot(a_ref[...], w_ref[...], preferred_element_type=jnp.float32)
        + b_ref[...]
        + r_ref[...]
    )


# ----------------------------- pallas_call wrappers -------------------------

def conv1_with_stats(a, w, tm):
    mp, k = a.shape
    _, c = w.shape
    flops = 2 * mp * k * c
    bytes_accessed = 2 * mp * k + 2 * k * c + 4 * mp * c + 4 * SUBLANE * c
    return pl.pallas_call(
        _conv1_stats_kernel,
        out_shape=(jax.ShapeDtypeStruct((mp, c), jnp.float32),
                   jax.ShapeDtypeStruct((SUBLANE, c), jnp.float32)),
        grid_spec=pltpu.PrefetchScalarGridSpec(
            num_scalar_prefetch=0,
            grid=(mp // tm,),
            in_specs=[pl.BlockSpec((tm, k), lambda i: (i, 0)),
                      pl.BlockSpec((k, c), lambda i: (0, 0))],
            out_specs=[pl.BlockSpec((tm, c), lambda i: (i, 0)),
                       pl.BlockSpec((SUBLANE, c), lambda i: (0, 0))],
            scratch_shapes=[pltpu.VMEM((SUBLANE, c), jnp.float32)]),
        compiler_params=pltpu.CompilerParams(
            dimension_semantics=("arbitrary",),   # stats reduction carried across M
            vmem_limit_bytes=VMEM_LIMIT),
        cost_estimate=pl.CostEstimate(flops=flops, transcendentals=0,
                                      bytes_accessed=bytes_accessed),
    )(a, w)


def bn_relu(y, stats, gamma, beta, tm, count):
    mp, c = y.shape
    kern = functools.partial(_bn_relu_kernel, count=count)
    bytes_accessed = 2 * 4 * mp * c + 4 * (SUBLANE + 2) * c
    return pl.pallas_call(
        kern,
        out_shape=jax.ShapeDtypeStruct((mp, c), jnp.float32),
        grid_spec=pltpu.PrefetchScalarGridSpec(
            num_scalar_prefetch=0,
            grid=(mp // tm,),
            in_specs=[pl.BlockSpec((tm, c), lambda i: (i, 0)),
                      pl.BlockSpec((SUBLANE, c), lambda i: (0, 0)),
                      pl.BlockSpec((1, c), lambda i: (0, 0)),
                      pl.BlockSpec((1, c), lambda i: (0, 0))],
            out_specs=pl.BlockSpec((tm, c), lambda i: (i, 0))),
        compiler_params=pltpu.CompilerParams(
            dimension_semantics=("parallel",),
            vmem_limit_bytes=VMEM_LIMIT),
        cost_estimate=pl.CostEstimate(flops=4 * mp * c, transcendentals=c,
                                      bytes_accessed=bytes_accessed),
    )(y, stats, gamma, beta)


def conv2_residual(a, w, b, r, tm):
    mp, k = a.shape
    _, c = w.shape
    flops = 2 * mp * k * c
    bytes_accessed = 2 * mp * k + 2 * k * c + 4 * c + 2 * 4 * mp * c
    return pl.pallas_call(
        _conv2_residual_kernel,
        out_shape=jax.ShapeDtypeStruct((mp, c), jnp.float32),
        grid_spec=pltpu.PrefetchScalarGridSpec(
            num_scalar_prefetch=0,
            grid=(mp // tm,),
            in_specs=[pl.BlockSpec((tm, k), lambda i: (i, 0)),
                      pl.BlockSpec((k, c), lambda i: (0, 0)),
                      pl.BlockSpec((1, c), lambda i: (0, 0)),
                      pl.BlockSpec((tm, c), lambda i: (i, 0))],
            out_specs=pl.BlockSpec((tm, c), lambda i: (i, 0))),
        compiler_params=pltpu.CompilerParams(
            dimension_semantics=("parallel",),
            vmem_limit_bytes=VMEM_LIMIT),
        cost_estimate=pl.CostEstimate(flops=flops, transcendentals=0,
                                      bytes_accessed=bytes_accessed),
    )(a, w, b, r)


# ----------------------------- JAX glue (channels-last im2col) --------------

def _im2col_nhwc(x, kh, kw, stride, pad):
    """x: [N, H, W, C] -> ([N*Ho*Wo, kh*kw*C], Ho, Wo); column order (kh, kw, c)."""
    n, h, w, c = x.shape
    ho = (h + 2 * pad - kh) // stride + 1
    wo = (w + 2 * pad - kw) // stride + 1
    xp = jnp.pad(x, ((0, 0), (pad, pad), (pad, pad), (0, 0)))
    cols = []
    for i in range(kh):
        for j in range(kw):
            cols.append(xp[:, i:i + stride * ho:stride, j:j + stride * wo:stride, :])
    cols = jnp.stack(cols, axis=3)                    # [N, Ho, Wo, kh*kw, C]
    return cols.reshape(n * ho * wo, kh * kw * c), ho, wo


def _prep_conv_weight(w, c_in_pad, c_out_pad, k_pad=None):
    """(O, I, KH, KW) torch-layout weight -> [KH*KW*c_in_pad(->k_pad), c_out_pad] bf16."""
    o, i, kh, kw = w.shape
    wp = jnp.pad(w, ((0, c_out_pad - o), (0, c_in_pad - i), (0, 0), (0, 0)))
    wm = jnp.transpose(wp, (2, 3, 1, 0)).reshape(kh * kw * c_in_pad, c_out_pad)
    if k_pad is not None and k_pad > wm.shape[0]:
        wm = jnp.pad(wm, ((0, k_pad - wm.shape[0]), (0, 0)))
    return wm.astype(jnp.bfloat16)


def cnn_layer_forward(x, params):
    """Forward of CNNLayer(dim_in, dim_out, residual=True, use_bn=True).

    x: [N, Cin, H, W] (NCHW), returns [N, Cout, Ho, Wo] (NCHW).
    """
    w1, b1, gamma, beta, w2, b2 = params
    del b1  # conv1 bias is exactly cancelled by training-mode BatchNorm mean subtraction
    n = x.shape[0]
    cin = x.shape[1]
    cout = w1.shape[0]
    cp = _round_up(cout, LANE)                         # lane-dense channel dim

    # ---- conv1: Conv2d(dim_in, dim_out, 5, 3, 1) as im2col matmul (channels-last) ----
    x_nhwc = jnp.transpose(x, (0, 2, 3, 1))            # NCHW -> NHWC, API boundary only
    a1, ho, wo = _im2col_nhwc(x_nhwc, 5, 5, stride=3, pad=1)
    m = n * ho * wo
    tm, mp = _pick_m_tile(m)
    k1 = a1.shape[1]
    k1p = _round_up(k1, LANE)
    a1 = jnp.pad(a1, ((0, mp - m), (0, k1p - k1))).astype(jnp.bfloat16)
    wm1 = _prep_conv_weight(w1, cin, cp, k1p)          # [K1p, Cp] bf16

    y1, stats = conv1_with_stats(a1, wm1, tm)          # y1: [Mp, Cp] pre-BN conv output

    # ---- BatchNorm2d (training batch stats) + ReLU, tiled over M ----
    gamma_p = jnp.pad(gamma, (0, cp - cout), constant_values=1.0).reshape(1, cp)
    beta_p = jnp.pad(beta, (0, cp - cout)).reshape(1, cp)
    # TODO(synk): running_mean / running_var update (training side effect) not modeled.
    y1r = bn_relu(y1, stats, gamma_p, beta_p, tm, count=float(m))

    # ---- conv2: Conv2d(dim_out, dim_out, 3, 1, 1) + bias + residual ----
    # TODO(synk): conv2 still uses a plain-JAX im2col patch slab instead of an
    # in-kernel halo-tile accumulation of 9 shifted matmuls (layout stays NHWC).
    y1_img = y1r[:m].reshape(n, ho, wo, cp)
    a2, _, _ = _im2col_nhwc(y1_img, 3, 3, stride=1, pad=1)    # K2 = 9*Cp, lane-aligned
    a2 = jnp.pad(a2, ((0, mp - m), (0, 0))).astype(jnp.bfloat16)
    wm2 = _prep_conv_weight(w2, cp, cp)                # [9*Cp, Cp] bf16
    b2_p = jnp.pad(b2, (0, cp - cout)).reshape(1, cp)

    y2 = conv2_residual(a2, wm2, b2_p, y1r, tm)        # [Mp, Cp]

    out = y2[:m, :cout].reshape(n, ho, wo, cout)
    return jnp.transpose(out, (0, 3, 1, 2))            # NHWC -> NCHW, API boundary only


# ----------------------------- reference (plain JAX, f32 HIGHEST) -----------

def reference_forward(x, params):
    w1, b1, gamma, beta, w2, b2 = params
    dn = ('NCHW', 'OIHW', 'NCHW')
    hp = jax.lax.Precision.HIGHEST
    y = jax.lax.conv_general_dilated(
        x, w1, (3, 3), ((1, 1), (1, 1)), dimension_numbers=dn, precision=hp
    ) + b1[None, :, None, None]
    m = y.mean(axis=(0, 2, 3), keepdims=True)
    v = jnp.square(y - m).mean(axis=(0, 2, 3), keepdims=True)
    y = (y - m) * jax.lax.rsqrt(v + BN_EPS) * gamma[None, :, None, None] \
        + beta[None, :, None, None]
    y = jnp.maximum(y, 0.0)
    y2 = jax.lax.conv_general_dilated(
        y, w2, (1, 1), ((1, 1), (1, 1)), dimension_numbers=dn, precision=hp
    ) + b2[None, :, None, None] + y
    return y2


# ----------------------------- main ------------------------------------------

if __name__ == "__main__":
    dim_in, dim_out = 4, 8
    N, H, W = 2, 16, 16

    key = jax.random.PRNGKey(0)
    k1, k2, k3, k4, k5 = jax.random.split(key, 5)

    # Deterministic synthetic parameters (shapes per nn.Conv2d / nn.BatchNorm2d init).
    w1 = jax.random.normal(k1, (dim_out, dim_in, 5, 5), jnp.float32) * 0.1
    b1 = jax.random.normal(k2, (dim_out,), jnp.float32) * 0.1
    gamma = jnp.ones((dim_out,), jnp.float32)   # BatchNorm2d default weight
    beta = jnp.zeros((dim_out,), jnp.float32)   # BatchNorm2d default bias
    w2 = jax.random.normal(k3, (dim_out, dim_out, 3, 3), jnp.float32) * 0.1
    b2 = jax.random.normal(k4, (dim_out,), jnp.float32) * 0.1
    params = (w1, b1, gamma, beta, w2, b2)

    x = jax.random.normal(k5, (N, dim_in, H, W), jnp.float32)

    out = jax.block_until_ready(jax.jit(cnn_layer_forward)(x, params))
    ref = jax.block_until_ready(reference_forward(x, params))

    assert out.shape == ref.shape, (out.shape, ref.shape)
    max_diff = jnp.max(jnp.abs(out - ref))
    # bf16 MXU operands (f32 accumulation) vs f32-HIGHEST reference -> loose tolerance.
    assert jnp.allclose(out, ref, atol=3e-2, rtol=3e-2), f"max abs diff = {max_diff}"

    print("KERNEL_OK")
</pallas_src>

<mosaic_0001>
module attributes {stable_mosaic.version = 11 : i64} {
  func.func @_conv1_stats_kernel(%arg0: i32, %arg1: memref<56x128xbf16, #tpu.memory_space<vmem>>, %arg2: memref<128x128xbf16, #tpu.memory_space<vmem>>, %arg3: memref<56x128xf32, #tpu.memory_space<vmem>>, %arg4: memref<8x128xf32, #tpu.memory_space<vmem>>, %arg5: memref<8x128xf32, #tpu.memory_space<vmem>>) attributes {dimension_semantics = [#tpu.dimension_semantics<arbitrary>], iteration_bounds = array<i64: 1>, scalar_prefetch = 0 : i64, scratch_operands = 1 : i64, tpu.core_type = #tpu.core_type<tc>, window_params = [{transform_indices = @transform_0, window_bounds = array<i64: 56, 128>}, {pipeline_mode = #tpu.pipeline_mode<synchronous>, transform_indices = @transform_1, window_bounds = array<i64: 128, 128>}, {transform_indices = @transform_2, window_bounds = array<i64: 56, 128>}, {pipeline_mode = #tpu.pipeline_mode<synchronous>, transform_indices = @transform_3, window_bounds = array<i64: 8, 128>}]} {
    %c0_i32 = arith.constant 0 : i32
    %0 = arith.cmpi eq, %arg0, %c0_i32 : i32
    %1 = arith.extui %0 : i1 to i32
    %c0_i32_0 = arith.constant 0 : i32
    %2 = arith.cmpi ne, %1, %c0_i32_0 : i32
    scf.if %2 {
      %cst_17 = arith.constant 0.000000e+00 : f32
      %21 = vector.broadcast %cst_17 : f32 to vector<8x128xf32>
      %c0_18 = arith.constant 0 : index
      %c0_19 = arith.constant 0 : index
      %22 = vector.load %arg5[%c0_18, %c0_19] : memref<8x128xf32, #tpu.memory_space<vmem>>, vector<8x128xf32>
      tpu.vector_store %arg5[%c0_18, %c0_19], %21 {strides = array<i32>} : memref<8x128xf32, #tpu.memory_space<vmem>>, vector<8x128xf32>,
    } else {
    }
    %c0 = arith.constant 0 : index
    %c0_1 = arith.constant 0 : index
    %3 = vector.load %arg1[%c0, %c0_1] : memref<56x128xbf16, #tpu.memory_space<vmem>>, vector<56x128xbf16>
    %c0_2 = arith.constant 0 : index
    %c0_3 = arith.constant 0 : index
    %4 = vector.load %arg2[%c0_2, %c0_3] : memref<128x128xbf16, #tpu.memory_space<vmem>>, vector<128x128xbf16>
    %cst = arith.constant dense<0.000000e+00> : vector<56x128xf32>
    %5 = tpu.matmul %3, %4, %cst {dimension_numbers = #tpu.dot_dimension_numbers<[1], [0], [0], [1], [0, 0, 1, 1], [], []>} : vector<56x128xbf16>, vector<128x128xbf16>, vector<56x128xf32> -> vector<56x128xf32>
    %c0_4 = arith.constant 0 : index
    %c0_5 = arith.constant 0 : index
    %6 = vector.load %arg3[%c0_4, %c0_5] : memref<56x128xf32, #tpu.memory_space<vmem>>, vector<56x128xf32>
    tpu.vector_store %arg3[%c0_4, %c0_5], %5 {strides = array<i32>} : memref<56x128xf32, #tpu.memory_space<vmem>>, vector<56x128xf32>,
    %c0_6 = arith.constant 0 : index
    %c0_7 = arith.constant 0 : index
    %7 = vector.load %arg5[%c0_6, %c0_7] : memref<8x128xf32, #tpu.memory_space<vmem>>, vector<1x128xf32>
    %cst_8 = arith.constant dense<0.000000e+00> : vector<128xf32>
    %8 = vector.multi_reduction <add>, %5, %cst_8 [0] : vector<56x128xf32> to vector<128xf32>
    %9 = vector.shape_cast %8 : vector<128xf32> to vector<1x128xf32>
    %10 = arith.addf %7, %9 : vector<1x128xf32>
    %c0_9 = arith.constant 0 : index
    %c0_10 = arith.constant 0 : index
    %11 = vector.load %arg5[%c0_9, %c0_10] : memref<8x128xf32, #tpu.memory_space<vmem>>, vector<1x128xf32>
    tpu.vector_store %arg5[%c0_9, %c0_10], %10 {strides = array<i32>} : memref<8x128xf32, #tpu.memory_space<vmem>>, vector<1x128xf32>,
    %c1 = arith.constant 1 : index
    %c0_11 = arith.constant 0 : index
    %12 = vector.load %arg5[%c1, %c0_11] : memref<8x128xf32, #tpu.memory_space<vmem>>, vector<1x128xf32>
    %13 = arith.mulf %5, %5 : vector<56x128xf32>
    %cst_12 = arith.constant dense<0.000000e+00> : vector<128xf32>
    %14 = vector.multi_reduction <add>, %13, %cst_12 [0] : vector<56x128xf32> to vector<128xf32>
    %15 = vector.shape_cast %14 : vector<128xf32> to vector<1x128xf32>
    %16 = arith.addf %12, %15 : vector<1x128xf32>
    %c1_13 = arith.constant 1 : index
    %c0_14 = arith.constant 0 : index
    %17 = vector.load %arg5[%c1_13, %c0_14] : memref<8x128xf32, #tpu.memory_space<vmem>>, vector<1x128xf32>
    tpu.vector_store %arg5[%c1_13, %c0_14], %16 {strides = array<i32>} : memref<8x128xf32, #tpu.memory_space<vmem>>, vector<1x128xf32>,
    %c0_i32_15 = arith.constant 0 : i32
    %18 = arith.cmpi eq, %arg0, %c0_i32_15 : i32
    %19 = arith.extui %18 : i1 to i32
    %c0_i32_16 = arith.constant 0 : i32
    %20 = arith.cmpi ne, %19, %c0_i32_16 : i32
    scf.if %20 {
      %c0_17 = arith.constant 0 : index
      %c0_18 = arith.constant 0 : index
      %21 = vector.load %arg5[%c0_17, %c0_18] : memref<8x128xf32, #tpu.memory_space<vmem>>, vector<8x128xf32>
      %c0_19 = arith.constant 0 : index
      %c0_20 = arith.constant 0 : index
      %22 = vector.load %arg4[%c0_19, %c0_20] : memref<8x128xf32, #tpu.memory_space<vmem>>, vector<8x128xf32>
      tpu.vector_store %arg4[%c0_19, %c0_20], %21 {strides = array<i32>} : memref<8x128xf32, #tpu.memory_space<vmem>>, vector<8x128xf32>,
    } else {
    }
    return
  }
  func.func @transform_0(%arg0: i32) -> (i32, i32) {
    %c0_i32 = arith.constant 0 : i32
    %c0_i32_0 = arith.constant 0 : i32
    return %arg0, %c0_i32 : i32, i32
  }
  func.func @transform_1(%arg0: i32) -> (i32, i32) {
    %c0_i32 = arith.constant 0 : i32
    %c0_i32_0 = arith.constant 0 : i32
    %c0_i32_1 = arith.constant 0 : i32
    return %c0_i32, %c0_i32_0 : i32, i32
  }
  func.func @transform_2(%arg0: i32) -> (i32, i32) {
    %c0_i32 = arith.constant 0 : i32
    %c0_i32_0 = arith.constant 0 : i32
    return %arg0, %c0_i32 : i32, i32
  }
  func.func @transform_3(%arg0: i32) -> (i32, i32) {
    %c0_i32 = arith.constant 0 : i32
    %c0_i32_0 = arith.constant 0 : i32
    %c0_i32_1 = arith.constant 0 : i32
    return %c0_i32, %c0_i32_0 : i32, i32
  }
}

module attributes {stable_mosaic.version = 11 : i64} {
  func.func @_bn_relu_kernel(%arg0: i32, %arg1: memref<56x128xf32, #tpu.memory_space<vmem>>, %arg2: memref<8x128xf32, #tpu.memory_space<vmem>>, %arg3: memref<1x128xf32, #tpu.memory_space<vmem>>, %arg4: memref<1x128xf32, #tpu.memory_space<vmem>>, %arg5: memref<56x128xf32, #tpu.memory_space<vmem>>) attributes {dimension_semantics = [#tpu.dimension_semantics<parallel>], iteration_bounds = array<i64: 1>, scalar_prefetch = 0 : i64, scratch_operands = 0 : i64, tpu.core_type = #tpu.core_type<tc>, window_params = [{transform_indices = @transform_0, window_bounds = array<i64: 56, 128>}, {pipeline_mode = #tpu.pipeline_mode<synchronous>, transform_indices = @transform_1, window_bounds = array<i64: 8, 128>}, {pipeline_mode = #tpu.pipeline_mode<synchronous>, transform_indices = @transform_2, window_bounds = array<i64: 1, 128>}, {pipeline_mode = #tpu.pipeline_mode<synchronous>, transform_indices = @transform_3, window_bounds = array<i64: 1, 128>}, {transform_indices = @transform_4, window_bounds = array<i64: 56, 128>}]} {
    %c0 = arith.constant 0 : index
    %c0_0 = arith.constant 0 : index
    %0 = vector.load %arg2[%c0, %c0_0] : memref<8x128xf32, #tpu.memory_space<vmem>>, vector<1x128xf32>
    %cst = arith.constant 2.000000e-02 : f32
    %1 = vector.broadcast %cst : f32 to vector<1x128xf32>
    %2 = arith.mulf %0, %1 : vector<1x128xf32>
    %c1 = arith.constant 1 : index
    %c0_1 = arith.constant 0 : index
    %3 = vector.load %arg2[%c1, %c0_1] : memref<8x128xf32, #tpu.memory_space<vmem>>, vector<1x128xf32>
    %cst_2 = arith.constant 2.000000e-02 : f32
    %4 = vector.broadcast %cst_2 : f32 to vector<1x128xf32>
    %5 = arith.mulf %3, %4 : vector<1x128xf32>
    %6 = arith.mulf %2, %2 : vector<1x128xf32>
    %7 = arith.subf %5, %6 : vector<1x128xf32>
    %cst_3 = arith.constant 0.000000e+00 : f32
    %8 = vector.broadcast %cst_3 : f32 to vector<1x128xf32>
    %9 = arith.maximumf %7, %8 : vector<1x128xf32>
    %cst_4 = arith.constant 9.99999974E-6 : f32
    %10 = vector.broadcast %cst_4 : f32 to vector<1x128xf32>
    %11 = arith.addf %9, %10 : vector<1x128xf32>
    %12 = math.rsqrt %11 : vector<1x128xf32>
    %c0_5 = arith.constant 0 : index
    %c0_6 = arith.constant 0 : index
    %13 = vector.load %arg3[%c0_5, %c0_6] : memref<1x128xf32, #tpu.memory_space<vmem>>, vector<1x128xf32>
    %14 = arith.mulf %13, %12 : vector<1x128xf32>
    %c0_7 = arith.constant 0 : index
    %c0_8 = arith.constant 0 : index
    %15 = vector.load %arg4[%c0_7, %c0_8] : memref<1x128xf32, #tpu.memory_space<vmem>>, vector<1x128xf32>
    %16 = arith.mulf %2, %14 : vector<1x128xf32>
    %17 = arith.subf %15, %16 : vector<1x128xf32>
    %c0_9 = arith.constant 0 : index
    %c0_10 = arith.constant 0 : index
    %18 = vector.load %arg1[%c0_9, %c0_10] : memref<56x128xf32, #tpu.memory_space<vmem>>, vector<56x128xf32>
    %19 = vector.broadcast %14 : vector<1x128xf32> to vector<56x128xf32>
    %20 = arith.mulf %18, %19 : vector<56x128xf32>
    %21 = vector.broadcast %17 : vector<1x128xf32> to vector<56x128xf32>
    %22 = arith.addf %20, %21 : vector<56x128xf32>
    %cst_11 = arith.constant 0.000000e+00 : f32
    %23 = vector.broadcast %cst_11 : f32 to vector<56x128xf32>
    %24 = arith.maximumf %22, %23 : vector<56x128xf32>
    %c0_12 = arith.constant 0 : index
    %c0_13 = arith.constant 0 : index
    %25 = vector.load %arg5[%c0_12, %c0_13] : memref<56x128xf32, #tpu.memory_space<vmem>>, vector<56x128xf32>
    tpu.vector_store %arg5[%c0_12, %c0_13], %24 {strides = array<i32>} : memref<56x128xf32, #tpu.memory_space<vmem>>, vector<56x128xf32>,
    return
  }
  func.func @transform_0(%arg0: i32) -> (i32, i32) {
    %c0_i32 = arith.constant 0 : i32
    %c0_i32_0 = arith.constant 0 : i32
    return %arg0, %c0_i32 : i32, i32
  }
  func.func @transform_1(%arg0: i32) -> (i32, i32) {
    %c0_i32 = arith.constant 0 : i32
    %c0_i32_0 = arith.constant 0 : i32
    %c0_i32_1 = arith.constant 0 : i32
    return %c0_i32, %c0_i32_0 : i32, i32
  }
  func.func @transform_2(%arg0: i32) -> (i32, i32) {
    %c0_i32 = arith.constant 0 : i32
    %c0_i32_0 = arith.constant 0 : i32
    %c0_i32_1 = arith.constant 0 : i32
    return %c0_i32, %c0_i32_0 : i32, i32
  }
  func.func @transform_3(%arg0: i32) -> (i32, i32) {
    %c0_i32 = arith.constant 0 : i32
    %c0_i32_0 = arith.constant 0 : i32
    %c0_i32_1 = arith.constant 0 : i32
    return %c0_i32, %c0_i32_0 : i32, i32
  }
  func.func @transform_4(%arg0: i32) -> (i32, i32) {
    %c0_i32 = arith.constant 0 : i32
    %c0_i32_0 = arith.constant 0 : i32
    return %arg0, %c0_i32 : i32, i32
  }
}

module attributes {stable_mosaic.version = 11 : i64} {
  func.func @_conv2_residual_kernel(%arg0: i32, %arg1: memref<56x1152xbf16, #tpu.memory_space<vmem>>, %arg2: memref<1152x128xbf16, #tpu.memory_space<vmem>>, %arg3: memref<1x128xf32, #tpu.memory_space<vmem>>, %arg4: memref<56x128xf32, #tpu.memory_space<vmem>>, %arg5: memref<56x128xf32, #tpu.memory_space<vmem>>) attributes {dimension_semantics = [#tpu.dimension_semantics<parallel>], iteration_bounds = array<i64: 1>, scalar_prefetch = 0 : i64, scratch_operands = 0 : i64, tpu.core_type = #tpu.core_type<tc>, window_params = [{transform_indices = @transform_0, window_bounds = array<i64: 56, 1152>}, {pipeline_mode = #tpu.pipeline_mode<synchronous>, transform_indices = @transform_1, window_bounds = array<i64: 1152, 128>}, {pipeline_mode = #tpu.pipeline_mode<synchronous>, transform_indices = @transform_2, window_bounds = array<i64: 1, 128>}, {transform_indices = @transform_3, window_bounds = array<i64: 56, 128>}, {transform_indices = @transform_4, window_bounds = array<i64: 56, 128>}]} {
    %c0 = arith.constant 0 : index
    %c0_0 = arith.constant 0 : index
    %0 = vector.load %arg1[%c0, %c0_0] : memref<56x1152xbf16, #tpu.memory_space<vmem>>, vector<56x1152xbf16>
    %c0_1 = arith.constant 0 : index
    %c0_2 = arith.constant 0 : index
    %1 = vector.load %arg2[%c0_1, %c0_2] : memref<1152x128xbf16, #tpu.memory_space<vmem>>, vector<1152x128xbf16>
    %cst = arith.constant dense<0.000000e+00> : vector<56x128xf32>
    %2 = tpu.matmul %0, %1, %cst {dimension_numbers = #tpu.dot_dimension_numbers<[1], [0], [0], [1], [0, 0, 1, 1], [], []>} : vector<56x1152xbf16>, vector<1152x128xbf16>, vector<56x128xf32> -> vector<56x128xf32>
    %c0_3 = arith.constant 0 : index
    %c0_4 = arith.constant 0 : index
    %3 = vector.load %arg3[%c0_3, %c0_4] : memref<1x128xf32, #tpu.memory_space<vmem>>, vector<1x128xf32>
    %4 = vector.broadcast %3 : vector<1x128xf32> to vector<56x128xf32>
    %5 = arith.addf %2, %4 : vector<56x128xf32>
    %c0_5 = arith.constant 0 : index
    %c0_6 = arith.constant 0 : index
    %6 = vector.load %arg4[%c0_5, %c0_6] : memref<56x128xf32, #tpu.memory_space<vmem>>, vector<56x128xf32>
    %7 = arith.addf %5, %6 : vector<56x128xf32>
    %c0_7 = arith.constant 0 : index
    %c0_8 = arith.constant 0 : index
    %8 = vector.load %arg5[%c0_7, %c0_8] : memref<56x128xf32, #tpu.memory_space<vmem>>, vector<56x128xf32>
    tpu.vector_store %arg5[%c0_7, %c0_8], %7 {strides = array<i32>} : memref<56x128xf32, #tpu.memory_space<vmem>>, vector<56x128xf32>,
    return
  }
  func.func @transform_0(%arg0: i32) -> (i32, i32) {
    %c0_i32 = arith.constant 0 : i32
    %c0_i32_0 = arith.constant 0 : i32
    return %arg0, %c0_i32 : i32, i32
  }
  func.func @transform_1(%arg0: i32) -> (i32, i32) {
    %c0_i32 = arith.constant 0 : i32
    %c0_i32_0 = arith.constant 0 : i32
    %c0_i32_1 = arith.constant 0 : i32
    return %c0_i32, %c0_i32_0 : i32, i32
  }
  func.func @transform_2(%arg0: i32) -> (i32, i32) {
    %c0_i32 = arith.constant 0 : i32
    %c0_i32_0 = arith.constant 0 : i32
    %c0_i32_1 = arith.constant 0 : i32
    return %c0_i32, %c0_i32_0 : i32, i32
  }
  func.func @transform_3(%arg0: i32) -> (i32, i32) {
    %c0_i32 = arith.constant 0 : i32
    %c0_i32_0 = arith.constant 0 : i32
    return %arg0, %c0_i32 : i32, i32
  }
  func.func @transform_4(%arg0: i32) -> (i32, i32) {
    %c0_i32 = arith.constant 0 : i32
    %c0_i32_0 = arith.constant 0 : i32
    return %arg0, %c0_i32 : i32, i32
  }
}

</mosaic_0001>

<bundles_post_ra>
// kernel: cnn_layer_forward.4
= control target key start
LH: loop header
LB: loop body
LE: loop exit
PB: predicated region body
PF: predicated region fallthrough
CT: control target
= control target key end

     0   :  { %v39_v8 = vlaneseq  ;;  %s163_s1 = inlined_call_operand.vmem [shape: f32[8,128], index: 1, kind: input, shape index: {}]   ;;  %s164_s2 = inlined_call_operand.vmem [shape: f32[1,128], index: 2, kind: input, shape index: {}]   ;;  %s165_s0 = inlined_call_operand.vmem [shape: f32[56,128], index: 0, kind: input, shape index: {}]   ;;  %s166_s3 = inlined_call_operand.vmem [shape: f32[1,128], index: 3, kind: input, shape index: {}]   ;;  %s167_s4 = inlined_call_operand.vmem [shape: f32[56,128], index: 4, kind: output, shape index: {}]  }
   0x1   :  { %v17_v0 = vld [vmem:[%s163_s1] sm:$0x1]  ;;  %v19_v1 = vld [vmem:[%s163_s1 + $0x1] sm:$0x1]  ;;  %v32_v16 = vld [vmem:[%s165_s0 + $0x8] sm:$0xff] }
   0x2   :  { %v18_v2 = vmul.f32 0.02, %v17_v0  ;;  %v20_v3 = vmul.f32 0.02, %v19_v1  ;;  %v40_v9 = vshrl.u32 %v39_v8, 7  ;;  %v31_v15 = vld [vmem:[%s165_s0] sm:$0xff] }
   0x3   :  { %v26_v10 = vld [vmem:[%s164_s2] sm:$0x1]  ;;  %v33_v17 = vld [vmem:[%s165_s0 + $0x10] sm:$0xff]  ;;  %v34_v18 = vld [vmem:[%s165_s0 + $0x18] sm:$0xff] }
   0x4   :  { %v21_v4 = vmul.f32 %v18_v2, %v18_v2  ;;  %v41_v11 = vsub.s32 0, %v40_v9  ;;  %v28_v14 = vld [vmem:[%s166_s3] sm:$0x1]  ;;  %v36_v22 = vld [vmem:[%s165_s0 + $0x28] sm:$0xff]  ;;  %v37_v23 = vld [vmem:[%s165_s0 + $0x30] sm:$0xff] }
   0x5   :  { %v35_v21 = vld [vmem:[%s165_s0 + $0x20] sm:$0xff] }
   0x6   :  { %v22_v5 = vsub.f32 %v20_v3, %v21_v4 }
   0x8   :  { %v23_v6 = vmax.f32 %v22_v5, 0.0 }
   0xa   :  { %v24_v7 = vadd.f32 1e-05, %v23_v6 }
   0xc   :  { %82 = vrsqrt.f32 %v24_v7 }
  0x19   :  { %v83_v12 = vpop.eup %82 }
  0x1a   :  { %v27_v13 = vmul.f32 %v83_v12, %v26_v10 }
  0x1c   :  { %v29_v19 = vmul.f32 %v27_v13, %v18_v2  ;;  %v42_v20 = vrot.slane %v27_v13, %v41_v11 }
  0x1e   :  { %v30_v24 = vsub.f32 %v28_v14, %v29_v19  ;;  %v44_v25 = vmul.f32 %v42_v20, %v31_v15  ;;  %v45_v26 = vmul.f32 %v42_v20, %v32_v16  ;;  %v46_v27 = vmul.f32 %v42_v20, %v33_v17 }
  0x1f   :  { %v47_v28 = vmul.f32 %v42_v20, %v34_v18  ;;  %v48_v29 = vmul.f32 %v42_v20, %v35_v21  ;;  %v49_v30 = vmul.f32 %v42_v20, %v36_v22  ;;  %v50_v31 = vmul.f32 %v42_v20, %v37_v23 }
  0x20   :  { %v55_v32 = vrot.slane %v30_v24, %v41_v11 }
  0x22   :  { %v57_v33 = vadd.f32 %v55_v32, %v44_v25  ;;  %v58_v34 = vadd.f32 %v55_v32, %v45_v26  ;;  %v59_v35 = vadd.f32 %v55_v32, %v46_v27  ;;  %v60_v36 = vadd.f32 %v55_v32, %v47_v28 }
  0x23   :  { %v61_v37 = vadd.f32 %v55_v32, %v48_v29  ;;  %v62_v38 = vadd.f32 %v55_v32, %v49_v30  ;;  %v63_v39 = vadd.f32 %v55_v32, %v50_v31 }
  0x24   :  { %v64_v40 = vmax.f32 %v57_v33, 0.0  ;;  %v65_v41 = vmax.f32 %v58_v34, 0.0  ;;  %v66_v42 = vmax.f32 %v59_v35, 0.0  ;;  %v67_v43 = vmax.f32 %v60_v36, 0.0 }
  0x25   :  { %v68_v44 = vmax.f32 %v61_v37, 0.0  ;;  %v69_v45 = vmax.f32 %v62_v38, 0.0  ;;  %v70_v46 = vmax.f32 %v63_v39, 0.0 }
  0x26   :  { %71 = vst [vmem:[%s167_s4] sm:$0xff] %v64_v40  ;;  %72 = vst [vmem:[%s167_s4 + $0x8] sm:$0xff] %v65_v41 }
  0x27   :  { %73 = vst [vmem:[%s167_s4 + $0x10] sm:$0xff] %v66_v42  ;;  %74 = vst [vmem:[%s167_s4 + $0x18] sm:$0xff] %v67_v43 }
  0x28   :  { %75 = vst [vmem:[%s167_s4 + $0x20] sm:$0xff] %v68_v44  ;;  %76 = vst [vmem:[%s167_s4 + $0x28] sm:$0xff] %v69_v45 }
  0x29   :  { %77 = vst [vmem:[%s167_s4 + $0x30] sm:$0xff] %v70_v46 }

// kernel: cnn_layer_forward.3
= control target key start
LH: loop header
LB: loop body
LE: loop exit
PB: predicated region body
PF: predicated region fallthrough
CT: control target
= control target key end

     0   :  { %v310_v12 = vmov 0.0   ;;  %s391_s1 = inlined_call_operand.vmem [shape: bf16[128,128], index: 1, kind: input, shape index: {}]   ;;  %s392_s0 = inlined_call_operand.vmem [shape: bf16[56,128], index: 0, kind: input, shape index: {}]   ;;  %s393_s2 = inlined_call_operand.vmem [shape: f32[56,128], index: 2, kind: output, shape index: {0}]   ;;  %s394_s3 = inlined_call_operand.vmem [shape: f32[8,128], index: 3, kind: output, shape index: {1}]  }
   0x1   :  { %v298_v0 = vld [vmem:[%s391_s1 + $0x38] sm:$0xff]   ;;  %v299_v1 = vld [vmem:[%s391_s1 + $0x30] sm:$0xff]   ;;  %v300_v2 = vld [vmem:[%s391_s1 + $0x28] sm:$0xff]   ;;  %18 = vst [vmem:[#allocation2] sm:$0xff] %v310_v12 }
   0x2   :  { %257 = vmatprep.subr.bf16.mxu0 %v298_v0  ;;  %281 = vmatprep.subr.bf16.mxu1 %v298_v0  ;;  %v301_v3 = vld [vmem:[%s391_s1 + $0x20] sm:$0xff]   ;;  %v308_v5 = vld [vmem:[%s392_s0 + $0x10] sm:$0xff]   ;;  %v302_v6 = vld [vmem:[%s391_s1 + $0x18] sm:$0xff]  }
   0x3   :  { %258 = vmatpush3.bf16.msra.mxu0 %v298_v0  ;;  %289 = vmatpush3.bf16.msra.mxu1 %v298_v0  ;;  %v306_v4 = vld [vmem:[%s392_s0] sm:$0xff]   ;;  %v303_v7 = vld [vmem:[%s391_s1 + $0x10] sm:$0xff]   ;;  %v304_v8 = vld [vmem:[%s391_s1 + $0x8] sm:$0xff]  }
   0x4   :  { %259 = vmatprep.subr.bf16.mxu0 %v299_v1  ;;  %282 = vmatprep.subr.bf16.mxu1 %v299_v1  ;;  %v305_v9 = vld [vmem:[%s391_s1] sm:$0xff]   ;;  %v307_v10 = vld [vmem:[%s392_s0 + $0x8] sm:$0xff]   ;;  %v309_v11 = vld [vmem:[%s392_s0 + $0x18] ss:$0 sps:$4 sm:$0xff]  }
   0x5   :  { %273 = vmatprep.mubr.bf16.mxu0 %v306_v4  ;;  %277 = vmatprep.mubr.bf16.mxu1 %v308_v5 }
   0x7   :  { %260 = vmatpush3.bf16.msra.mxu0 %v299_v1  ;;  %290 = vmatpush3.bf16.msra.mxu1 %v299_v1 }
   0x8   :  { %261 = vmatprep.subr.bf16.mxu0 %v300_v2  ;;  %283 = vmatprep.subr.bf16.mxu1 %v300_v2  ;;  %v183_v49 = vld [vmem:[#allocation2] sm:$0x1]  ;;  %v198_v52 = vld [vmem:[#allocation2 + $0x1] sm:$0x1] }
   0xb   :  { %262 = vmatpush3.bf16.msra.mxu0 %v300_v2  ;;  %291 = vmatpush3.bf16.msra.mxu1 %v300_v2 }
   0xc   :  { %263 = vmatprep.subr.bf16.mxu0 %v301_v3  ;;  %284 = vmatprep.subr.bf16.mxu1 %v301_v3 }
   0xf   :  { %264 = vmatpush3.bf16.msra.mxu0 %v301_v3  ;;  %292 = vmatpush3.bf16.msra.mxu1 %v301_v3 }
  0x10   :  { %265 = vmatprep.subr.bf16.mxu0 %v302_v6  ;;  %285 = vmatprep.subr.bf16.mxu1 %v302_v6 }
  0x13   :  { %266 = vmatpush3.bf16.msra.mxu0 %v302_v6  ;;  %293 = vmatpush3.bf16.msra.mxu1 %v302_v6 }
  0x14   :  { %267 = vmatprep.subr.bf16.mxu0 %v303_v7  ;;  %286 = vmatprep.subr.bf16.mxu1 %v303_v7 }
  0x17   :  { %268 = vmatpush3.bf16.msra.mxu0 %v303_v7  ;;  %294 = vmatpush3.bf16.msra.mxu1 %v303_v7 }
  0x18   :  { %269 = vmatprep.subr.bf16.mxu0 %v304_v8  ;;  %287 = vmatprep.subr.bf16.mxu1 %v304_v8 }
  0x1b   :  { %270 = vmatpush3.bf16.msra.mxu0 %v304_v8  ;;  %295 = vmatpush3.bf16.msra.mxu1 %v304_v8 }
  0x1c   :  { %271 = vmatprep.subr.bf16.mxu0 %v305_v9  ;;  %288 = vmatprep.subr.bf16.mxu1 %v305_v9 }
  0x1f   :  { %272 = vmatpush3.bf16.msra.mxu0 %v305_v9  ;;  %296 = vmatpush3.bf16.msra.mxu1 %v305_v9 }
  0x22   :  { %274 = vmatmul.mubr.bf16.vlgmr.msra.gmra.mxu0 %v307_v10  ;;  %278 = vmatmul.mubr.bf16.vlgmr.msra.gmra.mxu1 %v309_v11 }
  0xe2   :  { %v275_v13 = vpop.f32.mrf.mxu0  ;;  %v279_v14 = vpop.f32.mrf.mxu1 }
  0xe3   :  { %178 = vst [vmem:[%s393_s2 + $0x10] sm:$0xff] %v275_v13  ;;  %182 = vst [vmem:[%s393_s2 + $0x30] sm:$0xff] %v279_v14  ;;  %v201_v24 = vmul.f32 %v275_v13, %v275_v13  ;;  %v205_v36 = vmul.f32 %v279_v14, %v279_v14 }
  0xe4   :  { %v146_v15 = vpop.f32.mrf.mxu0  ;;  %v162_v16 = vpop.f32.mrf.mxu1 }
  0xe5   :  { %176 = vst [vmem:[%s393_s2] sm:$0xff] %v146_v15  ;;  %180 = vst [vmem:[%s393_s2 + $0x20] sm:$0xff] %v162_v16  ;;  %v199_v21 = vmul.f32 %v146_v15, %v146_v15  ;;  %v203_v30 = vmul.f32 %v162_v16, %v162_v16 }
  0xe6   :  { %v276_v17 = vpop.f32.mrf.mxu0  ;;  %v280_v18 = vpop.f32.mrf.mxu1 }
  0xe7   :  { %179 = vst [vmem:[%s393_s2 + $0x18] sm:$0xff] %v276_v17  ;;  %v202_v27 = vmul.f32 %v276_v17, %v276_v17 }
  0xe8   :  { %v149_v19 = vpop.f32.mrf.mxu0  ;;  %v165_v20 = vpop.f32.mrf.mxu1 }
  0xe9   :  { %177 = vst [vmem:[%s393_s2 + $0x8] sm:$0xff] %v149_v19  ;;  %v184_v22 = vadd.f32 %v149_v19, %v146_v15  ;;  %v200_v23 = vmul.f32 %v149_v19, %v149_v19  ;;  %181 = vst [vmem:[%s393_s2 + $0x28] sm:$0xff] %v165_v20  ;;  %v204_v34 = vmul.f32 %v165_v20, %v165_v20 }
  0xeb   :  { %v185_v25 = vadd.f32 %v275_v13, %v184_v22  ;;  %v206_v26 = vadd.f32 %v200_v23, %v199_v21 }
  0xed   :  { %v207_v28 = vadd.f32 %v206_v26, %v201_v24  ;;  %v186_v29 = vadd.f32 %v276_v17, %v185_v25 }
  0xef   :  { %v187_v31 = vadd.f32 %v186_v29, %v162_v16  ;;  %v208_v32 = vadd.f32 %v207_v28, %v202_v27 }
  0xf1   :  { %v188_v33 = vadd.f32 %v187_v31, %v165_v20  ;;  %v209_v35 = vadd.f32 %v208_v32, %v203_v30 }
  0xf3   :  { %v189_v37 = vadd.f32 %v279_v14, %v188_v33  ;;  %v210_v38 = vadd.f32 %v209_v35, %v204_v34 }
  0xf5   :  { %v190_v39 = vrot.slane %v189_v37, 4  ;;  %v211_v40 = vadd.f32 %v210_v38, %v205_v36 }
  0xf7   :  { %v191_v41 = vadd.f32 %v190_v39, %v189_v37  ;;  %v212_v42 = vrot.slane %v211_v40, 4 }
  0xf9   :  { %v192_v43 = vrot.slane %v191_v41, 2  ;;  %v213_v44 = vadd.f32 %v212_v42, %v211_v40 }
  0xfb   :  { %v193_v45 = vadd.f32 %v192_v43, %v191_v41  ;;  %v214_v46 = vrot.slane %v213_v44, 2 }
  0xfd   :  { %v194_v47 = vrot.slane %v193_v45, 1  ;;  %v215_v48 = vadd.f32 %v214_v46, %v213_v44 }
  0xff   :  { %v195_v50 = vadd.f32 %v194_v47, %v193_v45  ;;  %v216_v51 = vrot.slane %v215_v48, 1 }
 0x101   :  { %v196_v53 = vadd.f32 %v195_v50, %v183_v49  ;;  %v217_v54 = vadd.f32 %v216_v51, %v215_v48 }
 0x103   :  { %197 = vst [vmem:[#allocation2] sm:$0x1] %v196_v53  ;;  %v218_v55 = vadd.f32 %v217_v54, %v198_v52 }
 0x105   :  { %219 = vst [vmem:[#allocation2 + $0x1] sm:$0x1] %v218_v55 }
 0x10c   :  { %v223_v56 = vld [vmem:[#allocation2] sm:$0xff] }
 0x10d   :  { %224 = vst [vmem:[%s394_s3] sm:$0xff] %v223_v56 }

// kernel: cnn_layer_forward.5
= control target key start
LH: loop header
LB: loop body
LE: loop exit
PB: predicated region body
PF: predicated region fallthrough
CT: control target
= control target key end

     0   :  { %s2025_s1 = inlined_call_operand.vmem [shape: bf16[1152,128], index: 1, kind: input, shape index: {}]   ;;  %s2026_s0 = inlined_call_operand.vmem [shape: bf16[56,1152], index: 0, kind: input, shape index: {}]   ;;  %s2027_s2 = inlined_call_operand.vmem [shape: f32[1,128], index: 2, kind: input, shape index: {}]   ;;  %s2028_s3 = inlined_call_operand.vmem [shape: f32[56,128], index: 3, kind: input, shape index: {}]   ;;  %s2029_s4 = inlined_call_operand.vmem [shape: f32[56,128], index: 4, kind: output, shape index: {}]  }
   0x1   :  { %v1472_v0 = vld [vmem:[%s2025_s1 + $0x78] sm:$0xff]   ;;  %v1476_v4 = vld [vmem:[%s2025_s1 + $0x70] sm:$0xff]   ;;  %v1480_v8 = vld [vmem:[%s2025_s1 + $0x68] sm:$0xff]  }
   0x2   :  { %v1473_v1 = vld [vmem:[%s2025_s1 + $0xf8] sm:$0xff]   ;;  %1260 = vmatprep.subr.bf16.mxu0 %v1472_v0  ;;  %v1477_v5 = vld [vmem:[%s2025_s1 + $0xf0] sm:$0xff]   ;;  %v1481_v9 = vld [vmem:[%s2025_s1 + $0xe8] sm:$0xff]  }
   0x3   :  { %v1474_v2 = vld [vmem:[%s2025_s1 + $0x38] sm:$0xff]   ;;  %1300 = vmatprep.subr.bf16.mxu1 %v1473_v1  ;;  %v1478_v6 = vld [vmem:[%s2025_s1 + $0x30] sm:$0xff]   ;;  %v1482_v10 = vld [vmem:[%s2025_s1 + $0x28] sm:$0xff]  }
   0x4   :  { %v1475_v3 = vld [vmem:[%s2025_s1 + $0xb8] sm:$0xff]   ;;  %1261 = vmatpush3.bf16.msra.mxu0 %v1474_v2  ;;  %v1479_v7 = vld [vmem:[%s2025_s1 + $0xb0] sm:$0xff]   ;;  %v1483_v11 = vld [vmem:[%s2025_s1 + $0xa8] sm:$0xff]  }
   0x5   :  { %1301 = vmatpush3.bf16.msra.mxu1 %v1475_v3  ;;  %1262 = vmatprep.subr.bf16.mxu0 %v1476_v4  ;;  %v1484_v12 = vld [vmem:[%s2025_s1 + $0x60] sm:$0xff]   ;;  %v1488_v16 = vld [vmem:[%s2025_s1 + $0x58] sm:$0xff]   ;;  %v1492_v20 = vld [vmem:[%s2025_s1 + $0x50] sm:$0xff]  }
   0x6   :  { %1302 = vmatprep.subr.bf16.mxu1 %v1477_v5  ;;  %v1485_v13 = vld [vmem:[%s2025_s1 + $0xe0] sm:$0xff]   ;;  %v1489_v17 = vld [vmem:[%s2025_s1 + $0xd8] sm:$0xff]   ;;  %v1493_v21 = vld [vmem:[%s2025_s1 + $0xd0] sm:$0xff]  }
   0x7   :  { %v1486_v14 = vld [vmem:[%s2025_s1 + $0x20] sm:$0xff]   ;;  %v1490_v18 = vld [vmem:[%s2025_s1 + $0x18] sm:$0xff]   ;;  %v1494_v22 = vld [vmem:[%s2025_s1 + $0x10] sm:$0xff]  }
   0x8   :  { %1263 = vmatpush3.bf16.msra.mxu0 %v1478_v6  ;;  %v1487_v15 = vld [vmem:[%s2025_s1 + $0xa0] sm:$0xff]   ;;  %v1491_v19 = vld [vmem:[%s2025_s1 + $0x98] sm:$0xff]   ;;  %v1495_v23 = vld [vmem:[%s2025_s1 + $0x90] sm:$0xff]  }
   0x9   :  { %1303 = vmatpush3.bf16.msra.mxu1 %v1479_v7  ;;  %1264 = vmatprep.subr.bf16.mxu0 %v1480_v8  ;;  %v1496_v24 = vld [vmem:[%s2025_s1 + $0x48] sm:$0xff]   ;;  %v1500_v28 = vld [vmem:[%s2025_s1 + $0x40] sm:$0xff]   ;;  %v1510_v36 = vld [vmem:[%s2025_s1 + $0x178] sm:$0xff]  }
   0xa   :  { %1304 = vmatprep.subr.bf16.mxu1 %v1481_v9  ;;  %v1497_v25 = vld [vmem:[%s2025_s1 + $0xc8] sm:$0xff]   ;;  %v1501_v29 = vld [vmem:[%s2025_s1 + $0xc0] sm:$0xff]   ;;  %v1511_v37 = vld [vmem:[%s2025_s1 + $0x1f8] sm:$0xff]  }
   0xb   :  { %v1498_v26 = vld [vmem:[%s2025_s1 + $0x8] sm:$0xff]   ;;  %v1502_v30 = vld [vmem:[%s2025_s1] sm:$0xff]   ;;  %v1512_v38 = vld [vmem:[%s2025_s1 + $0x138] sm:$0xff]  }
   0xc   :  { %1265 = vmatpush3.bf16.msra.mxu0 %v1482_v10  ;;  %v1499_v27 = vld [vmem:[%s2025_s1 + $0x88] sm:$0xff]   ;;  %v1503_v31 = vld [vmem:[%s2025_s1 + $0x80] sm:$0xff]   ;;  %v1513_v39 = vld [vmem:[%s2025_s1 + $0x1b8] sm:$0xff]  }
   0xd   :  { %1305 = vmatpush3.bf16.msra.mxu1 %v1483_v11  ;;  %1266 = vmatprep.subr.bf16.mxu0 %v1484_v12  ;;  %v1504_v32 = vld [vmem:[%s2026_s0] ss:$36 sps:$4 sm:$0xff]   ;;  %v1507_v34 = vld [vmem:[%s2026_s0 + $0x8] ss:$36 sps:$4 sm:$0xff]   ;;  %v1514_v40 = vld [vmem:[%s2025_s1 + $0x170] sm:$0xff]  }
   0xe   :  { %1306 = vmatprep.subr.bf16.mxu1 %v1485_v13  ;;  %v1506_v33 = vld [vmem:[%s2026_s0 + $0x4] ss:$36 sps:$4 sm:$0xff]   ;;  %v1509_v35 = vld [vmem:[%s2026_s0 + $0xc] ss:$36 sps:$4 sm:$0xff]   ;;  %v1520_v45 = vld [vmem:[%s2026_s0 + $0x54] ss:$36 sps:$4 sm:$0xff]  }
   0xf   :  { %838 = vmatprep.mubr.bf16.mxu0 %v1506_v33  ;;  %902 = vmatprep.mubr.bf16.mxu1 %v1509_v35  ;;  %v1515_v41 = vld [vmem:[%s2025_s1 + $0x1f0] sm:$0xff]   ;;  %v1522_v46 = vld [vmem:[%s2026_s0 + $0x48] ss:$36 sps:$4 sm:$0xff]   ;;  %v1528_v52 = vld [vmem:[%s2025_s1 + $0x160] sm:$0xff]  }
  0x10   :  { %1267 = vmatpush3.bf16.msra.mxu0 %v1486_v14  ;;  %v1516_v42 = vld [vmem:[%s2025_s1 + $0x130] sm:$0xff]   ;;  %v1524_v48 = vld [vmem:[%s2025_s1 + $0x168] sm:$0xff]   ;;  %v1529_v53 = vld [vmem:[%s2025_s1 + $0x1e0] sm:$0xff]  }
  0x11   :  { %1307 = vmatpush3.bf16.msra.mxu1 %v1487_v15  ;;  %1268 = vmatprep.subr.bf16.mxu0 %v1488_v16  ;;  %v1517_v43 = vld [vmem:[%s2025_s1 + $0x1b0] sm:$0xff]   ;;  %v1525_v49 = vld [vmem:[%s2025_s1 + $0x1e8] sm:$0xff]   ;;  %v1530_v54 = vld [vmem:[%s2025_s1 + $0x120] sm:$0xff]  }
  0x12   :  { %1308 = vmatprep.subr.bf16.mxu1 %v1489_v17  ;;  %v1518_v44 = vld [vmem:[%s2026_s0 + $0x4c] ss:$36 sps:$4 sm:$0xff]   ;;  %v1531_v55 = vld [vmem:[%s2025_s1 + $0x1a0] sm:$0xff]   ;;  %v1532_v56 = vld [vmem:[%s2026_s0 + $0x94] ss:$36 sps:$4 sm:$0xff]  }
  0x13   :  { %v1523_v47 = vld [vmem:[%s2026_s0 + $0x50] ss:$36 sps:$4 sm:$0xff]   ;;  %v1526_v50 = vld [vmem:[%s2025_s1 + $0x128] sm:$0xff]   ;;  %v1534_v57 = vld [vmem:[%s2026_s0 + $0x9c] ss:$36 sps:$4 sm:$0xff]  }
  0x14   :  { %1269 = vmatpush3.bf16.msra.mxu0 %v1490_v18  ;;  %v1527_v51 = vld [vmem:[%s2025_s1 + $0x1a8] sm:$0xff]   ;;  %v1536_v58 = vld [vmem:[%s2026_s0 + $0x90] ss:$36 sps:$4 sm:$0xff]   ;;  %v1537_v59 = vld [vmem:[%s2026_s0 + $0x98] ss:$36 sps:$4 sm:$0xff]  }
  0x15   :  { %1309 = vmatpush3.bf16.msra.mxu1 %v1491_v19  ;;  %1270 = vmatprep.subr.bf16.mxu0 %v1492_v20  ;;  %v1538_v60 = vld [vmem:[%s2025_s1 + $0x158] sm:$0xff]   ;;  %v1542_v0 = vld [vmem:[%s2025_s1 + $0x150] sm:$0xff]   ;;  %v49_v5 = vld [vmem:[%s2026_s0 + $0xe0] sm:$0xff] }
  0x16   :  { %1310 = vmatprep.subr.bf16.mxu1 %v1493_v21  ;;  %v1539_v61 = vld [vmem:[%s2025_s1 + $0x1d8] sm:$0xff]   ;;  %v1543_v1 = vld [vmem:[%s2025_s1 + $0x1d0] sm:$0xff]   ;;  %v1182_v7 = vcombine.high %v49_v5, %v49_v5  ;;  %v1181_v9 = vcombine.low %v49_v5, %v49_v5  ;;  %v1550_v10 = vld [vmem:[%s2025_s1 + $0x148] sm:$0xff]  }
  0x17   :  { %v1540_v62 = vld [vmem:[%s2025_s1 + $0x118] sm:$0xff]   ;;  %v1544_v2 = vld [vmem:[%s2025_s1 + $0x110] sm:$0xff]   ;;  %v1551_v11 = vld [vmem:[%s2025_s1 + $0x1c8] sm:$0xff]  }
  0x18   :  { %1271 = vmatpush3.bf16.msra.mxu0 %v1494_v22  ;;  %v1541_v63 = vld [vmem:[%s2025_s1 + $0x198] sm:$0xff]   ;;  %v1545_v3 = vld [vmem:[%s2025_s1 + $0x190] sm:$0xff]   ;;  %v1552_v12 = vld [vmem:[%s2025_s1 + $0x108] sm:$0xff]  }
  0x19   :  { %1311 = vmatpush3.bf16.msra.mxu1 %v1495_v23  ;;  %1272 = vmatprep.subr.bf16.mxu0 %v1496_v24  ;;  %v48_v4 = vld [vmem:[%s2026_s0 + $0xd8] sm:$0xff]  ;;  %v1553_v13 = vld [vmem:[%s2025_s1 + $0x188] sm:$0xff]   ;;  %v1554_v14 = vld [vmem:[%s2025_s1 + $0x140] sm:$0xff]  }
  0x1a   :  { %1312 = vmatprep.subr.bf16.mxu1 %v1497_v25  ;;  %v1180_v6 = vcombine.high %v48_v4, %v48_v4  ;;  %v1179_v8 = vcombine.low %v48_v4, %v48_v4  ;;  %v1555_v15 = vld [vmem:[%s2025_s1 + $0x1c0] sm:$0xff]   ;;  %v1558_v18 = vld [vmem:[%s2026_s0 + $0x10] ss:$36 sps:$4 sm:$0xff]   ;;  %v1561_v20 = vld [vmem:[%s2026_s0 + $0x18] ss:$36 sps:$4 sm:$0xff]  }
  0x1b   :  { %v1556_v16 = vld [vmem:[%s2025_s1 + $0x100] sm:$0xff]   ;;  %v1560_v19 = vld [vmem:[%s2026_s0 + $0x14] ss:$36 sps:$4 sm:$0xff]   ;;  %v50_v33 = vld [vmem:[%s2026_s0 + $0xe8] sm:$0xff] }
  0x1c   :  { %1273 = vmatpush3.bf16.msra.mxu0 %v1498_v26  ;;  %v1557_v17 = vld [vmem:[%s2025_s1 + $0x180] sm:$0xff]   ;;  %v1564_v22 = vld [vmem:[%s2025_s1 + $0x238] sm:$0xff]   ;;  %v1565_v23 = vld [vmem:[%s2025_s1 + $0x230] sm:$0xff]  }
  0x1d   :  { %1313 = vmatpush3.bf16.msra.mxu1 %v1499_v27  ;;  %1274 = vmatprep.subr.bf16.mxu0 %v1500_v28  ;;  %v1563_v21 = vld [vmem:[%s2026_s0 + $0x1c] ss:$36 sps:$4 sm:$0xff]   ;;  %v1568_v25 = vld [vmem:[%s2026_s0 + $0x64] ss:$36 sps:$4 sm:$0xff]  }
  0x1e   :  { %1314 = vmatprep.subr.bf16.mxu1 %v1501_v29  ;;  %v1566_v24 = vld [vmem:[%s2026_s0 + $0x5c] ss:$36 sps:$4 sm:$0xff]   ;;  %v1572_v27 = vld [vmem:[%s2025_s1 + $0x228] sm:$0xff]  }
  0x1f   :  { %v1570_v26 = vld [vmem:[%s2026_s0 + $0x58] ss:$36 sps:$4 sm:$0xff]   ;;  %v1571_v28 = vld [vmem:[%s2026_s0 + $0x60] ss:$36 sps:$4 sm:$0xff]  }
  0x20   :  { %1275 = vmatpush3.bf16.msra.mxu0 %v1502_v30  ;;  %v1574_v29 = vld [vmem:[%s2026_s0 + $0xa4] ss:$36 sps:$4 sm:$0xff]   ;;  %v1576_v30 = vld [vmem:[%s2026_s0 + $0xac] ss:$36 sps:$4 sm:$0xff]  }
  0x21   :  { %1315 = vmatpush3.bf16.msra.mxu1 %v1503_v31  ;;  %1340 = vmatprep.subr.bf16.mxu0 %v1510_v36  ;;  %v1573_v31 = vld [vmem:[%s2025_s1 + $0x220] sm:$0xff]   ;;  %v1579_v36 = vld [vmem:[%s2026_s0 + $0xa8] ss:$36 sps:$4 sm:$0xff]  }
  0x22   :  { %1380 = vmatprep.subr.bf16.mxu1 %v1511_v37  ;;  %v1578_v35 = vld [vmem:[%s2026_s0 + $0xa0] ss:$36 sps:$4 sm:$0xff]   ;;  %v1184_v37 = vcombine.high %v50_v33, %v50_v33 }
  0x23   :  { %839 = vmatmul.mubr.bf16.vlgmr.msra.gmra.mxu0 %v1504_v32  ;;  %v1580_v32 = vld [vmem:[%s2025_s1 + $0x218] sm:$0xff]  }
  0x24   :  { %903 = vmatmul.mubr.bf16.vlgmr.msra.gmra.mxu1 %v1507_v34  ;;  %1341 = vmatpush3.bf16.msra.mxu0 %v1512_v38  ;;  %v51_v34 = vld [vmem:[%s2026_s0 + $0xf0] sm:$0xff] }
  0x25   :  { %1381 = vmatpush3.bf16.msra.mxu1 %v1513_v39  ;;  %1342 = vmatprep.subr.bf16.mxu0 %v1514_v40  ;;  %v1186_v38 = vcombine.high %v51_v34, %v51_v34  ;;  %v1581_v39 = vld [vmem:[%s2025_s1 + $0x210] sm:$0xff]   ;;  %v1586_v40 = vld [vmem:[%s2025_s1 + $0x208] sm:$0xff]  }
  0x26   :  { %1382 = vmatprep.subr.bf16.mxu1 %v1515_v41  ;;  %846 = vmatprep.mubr.bf16.mxu0 %v1518_v44  ;;  %v1183_v41 = vcombine.low %v50_v33, %v50_v33  ;;  %v1589_v44 = vld [vmem:[%s2026_s0 + $0xb0] ss:$36 sps:$4 sm:$0xff]  }
  0x27   :  { %910 = vmatprep.mubr.bf16.mxu1 %v1520_v45  ;;  %v1587_v45 = vld [vmem:[%s2025_s1 + $0x200] sm:$0xff]  }
  0x28   :  { %1343 = vmatpush3.bf16.msra.mxu0 %v1516_v42  ;;  %v1185_v42 = vcombine.low %v51_v34, %v51_v34 }
  0x29   :  { %1383 = vmatpush3.bf16.msra.mxu1 %v1517_v43  ;;  %1344 = vmatprep.subr.bf16.mxu0 %v1524_v48  ;;  %v1588_v43 = vld [vmem:[%s2026_s0 + $0x20] ss:$36 sps:$4 sm:$0xff]  }
  0x2a   :  { %1384 = vmatprep.subr.bf16.mxu1 %v1525_v49 }
  0x2b   :  { %847 = vmatmul.mubr.bf16.gmra.mxu0 %v1522_v46  ;;  %v1590_v46 = vld [vmem:[%s2026_s0 + $0x68] ss:$36 sps:$4 sm:$0xff]  }
  0x2c   :  { %911 = vmatmul.mubr.bf16.gmra.mxu1 %v1523_v47  ;;  %1345 = vmatpush3.bf16.msra.mxu0 %v1526_v50  ;;  %v1591_v47 = vld [vmem:[%s2026_s0 + $0xf8] ss:$0 sps:$4 sm:$0xff]  }
  0x2d   :  { %1385 = vmatpush3.bf16.msra.mxu1 %v1527_v51  ;;  %1346 = vmatprep.subr.bf16.mxu0 %v1528_v52 }
  0x2e   :  { %1386 = vmatprep.subr.bf16.mxu1 %v1529_v53  ;;  %854 = vmatprep.mubr.bf16.mxu0 %v1532_v56 }
  0x2f   :  { %918 = vmatprep.mubr.bf16.mxu1 %v1534_v57 }
  0x30   :  { %1347 = vmatpush3.bf16.msra.mxu0 %v1530_v54 }
  0x31   :  { %1387 = vmatpush3.bf16.msra.mxu1 %v1531_v55  ;;  %1348 = vmatprep.subr.bf16.mxu0 %v1538_v60 }
  0x32   :  { %1388 = vmatprep.subr.bf16.mxu1 %v1539_v61 }
  0x33   :  { %855 = vmatmul.mubr.bf16.gmra.mxu0 %v1536_v58 }
  0x34   :  { %919 = vmatmul.mubr.bf16.gmra.mxu1 %v1537_v59  ;;  %1349 = vmatpush3.bf16.msra.mxu0 %v1540_v62 }
  0x35   :  { %1389 = vmatpush3.bf16.msra.mxu1 %v1541_v63  ;;  %1350 = vmatprep.subr.bf16.mxu0 %v1542_v0 }
  0x36   :  { %1390 = vmatprep.subr.bf16.mxu1 %v1543_v1  ;;  %862 = vmatprep.mubr.bf16.mxu0 %v1180_v6 }
  0x37   :  { %926 = vmatprep.mubr.bf16.mxu1 %v1182_v7 }
  0x38   :  { %1351 = vmatpush3.bf16.msra.mxu0 %v1544_v2 }
  0x39   :  { %1391 = vmatpush3.bf16.msra.mxu1 %v1545_v3  ;;  %1352 = vmatprep.subr.bf16.mxu0 %v1550_v10 }
  0x3a   :  { %1392 = vmatprep.subr.bf16.mxu1 %v1551_v11 }
  0x3b   :  { %863 = vmatmul.mubr.bf16.gmra.mxu0 %v1179_v8 }
  0x3c   :  { %927 = vmatmul.mubr.bf16.gmra.mxu1 %v1181_v9  ;;  %1353 = vmatpush3.bf16.msra.mxu0 %v1552_v12 }
  0x3d   :  { %1393 = vmatpush3.bf16.msra.mxu1 %v1553_v13  ;;  %1354 = vmatprep.subr.bf16.mxu0 %v1554_v14 }
  0x3e   :  { %1394 = vmatprep.subr.bf16.mxu1 %v1555_v15  ;;  %966 = vmatprep.mubr.bf16.mxu0 %v1560_v19 }
  0x3f   :  { %1030 = vmatprep.mubr.bf16.mxu1 %v1563_v21 }
  0x40   :  { %1355 = vmatpush3.bf16.msra.mxu0 %v1556_v16 }
  0x41   :  { %1395 = vmatpush3.bf16.msra.mxu1 %v1557_v17  ;;  %1432 = vmatprep.subr.bf16.mxu0 %v1564_v22 }
  0x42   :  { %1456 = vmatprep.subr.bf16.mxu1 %v1564_v22 }
  0x43   :  { %967 = vmatmul.mubr.bf16.vlgmr.msra.gmra.mxu0 %v1558_v18 }
  0x44   :  { %1031 = vmatmul.mubr.bf16.vlgmr.msra.gmra.mxu1 %v1561_v20  ;;  %1433 = vmatpush3.bf16.msra.mxu0 %v1564_v22 }
  0x45   :  { %1464 = vmatpush3.bf16.msra.mxu1 %v1564_v22  ;;  %1434 = vmatprep.subr.bf16.mxu0 %v1565_v23 }
  0x46   :  { %1457 = vmatprep.subr.bf16.mxu1 %v1565_v23  ;;  %974 = vmatprep.mubr.bf16.mxu0 %v1566_v24 }
  0x47   :  { %1038 = vmatprep.mubr.bf16.mxu1 %v1568_v25 }
  0x48   :  { %1435 = vmatpush3.bf16.msra.mxu0 %v1565_v23 }
  0x49   :  { %1465 = vmatpush3.bf16.msra.mxu1 %v1565_v23  ;;  %1436 = vmatprep.subr.bf16.mxu0 %v1572_v27 }
  0x4a   :  { %1458 = vmatprep.subr.bf16.mxu1 %v1572_v27 }
  0x4b   :  { %975 = vmatmul.mubr.bf16.gmra.mxu0 %v1570_v26 }
  0x4c   :  { %1039 = vmatmul.mubr.bf16.gmra.mxu1 %v1571_v28  ;;  %982 = vmatprep.mubr.bf16.mxu0 %v1574_v29 }
  0x4d   :  { %1437 = vmatpush3.bf16.msra.mxu0 %v1572_v27  ;;  %1046 = vmatprep.mubr.bf16.mxu1 %v1576_v30 }
  0x4e   :  { %1466 = vmatpush3.bf16.msra.mxu1 %v1572_v27  ;;  %1438 = vmatprep.subr.bf16.mxu0 %v1573_v31 }
  0x4f   :  { %1459 = vmatprep.subr.bf16.mxu1 %v1573_v31 }
  0x51   :  { %1439 = vmatpush3.bf16.msra.mxu0 %v1573_v31 }
  0x52   :  { %1467 = vmatpush3.bf16.msra.mxu1 %v1573_v31  ;;  %1440 = vmatprep.subr.bf16.mxu0 %v1580_v32 }
  0x53   :  { %983 = vmatmul.mubr.bf16.gmra.mxu0 %v1578_v35  ;;  %1460 = vmatprep.subr.bf16.mxu1 %v1580_v32  ;;  %v1151_v35 = vld [vmem:[%s2027_s2] ss:$0 sm:$0xff] }
  0x54   :  { %1047 = vmatmul.mubr.bf16.gmra.mxu1 %v1579_v36  ;;  %990 = vmatprep.mubr.bf16.mxu0 %v1184_v37 }
  0x55   :  { %1441 = vmatpush3.bf16.msra.mxu0 %v1580_v32  ;;  %1054 = vmatprep.mubr.bf16.mxu1 %v1186_v38 }
  0x56   :  { %1468 = vmatpush3.bf16.msra.mxu1 %v1580_v32  ;;  %1442 = vmatprep.subr.bf16.mxu0 %v1581_v39 }
  0x57   :  { %1461 = vmatprep.subr.bf16.mxu1 %v1581_v39 }
  0x59   :  { %1443 = vmatpush3.bf16.msra.mxu0 %v1581_v39 }
  0x5a   :  { %1469 = vmatpush3.bf16.msra.mxu1 %v1581_v39  ;;  %1444 = vmatprep.subr.bf16.mxu0 %v1586_v40 }
  0x5b   :  { %991 = vmatmul.mubr.bf16.gmra.mxu0 %v1183_v41  ;;  %1462 = vmatprep.subr.bf16.mxu1 %v1586_v40 }
  0x5c   :  { %1055 = vmatmul.mubr.bf16.gmra.mxu1 %v1185_v42  ;;  %1448 = vmatprep.mubr.bf16.mxu0 %v1588_v43 }
  0x5d   :  { %1445 = vmatpush3.bf16.msra.mxu0 %v1586_v40  ;;  %1452 = vmatprep.mubr.bf16.mxu1 %v1589_v44 }
  0x5e   :  { %1470 = vmatpush3.bf16.msra.mxu1 %v1586_v40  ;;  %1446 = vmatprep.subr.bf16.mxu0 %v1587_v45 }
  0x5f   :  { %1463 = vmatprep.subr.bf16.mxu1 %v1587_v45 }
  0x61   :  { %1447 = vmatpush3.bf16.msra.mxu0 %v1587_v45 }
  0x62   :  { %1471 = vmatpush3.bf16.msra.mxu1 %v1587_v45 }
  0x64   :  { %1449 = vmatmul.mubr.bf16.vlgmr.msra.gmra.mxu0 %v1590_v46 }
  0x65   :  { %1453 = vmatmul.mubr.bf16.vlgmr.msra.gmra.mxu1 %v1591_v47 }
  0xe3   :  { %v1276_v48 = vpop.f32.mrf.mxu0 }
  0xe4   :  { %v1929_v49 = vpop.f32.mrf.mxu1 }
  0xe5   :  { %v1277_v50 = vpop.f32.mrf.mxu0 }
  0xe6   :  { %v1317_v51 = vpop.f32.mrf.mxu1  ;;  %v1278_v33 = vadd.f32 %v1277_v50, %v1276_v48 }
  0xe7   :  { %v1931_v52 = vpop.f32.mrf.mxu0  ;;  %v1318_v47 = vadd.f32 %v1317_v51, %v1929_v49 }
  0xe8   :  { %v1933_v53 = vpop.f32.mrf.mxu1  ;;  %v841_v41 = vadd.f32 %v1278_v33, %v1151_v35 }
  0xe9   :  { %v1280_v54 = vpop.f32.mrf.mxu0 }
  0xea   :  { %v1935_v55 = vpop.f32.mrf.mxu1 }
  0xeb   :  { %v1282_v56 = vpop.f32.mrf.mxu0 }
  0xec   :  { %v1322_v57 = vpop.f32.mrf.mxu1 }
  0xed   :  { %v1283_v58 = vpop.f32.mrf.mxu0 }
  0xee   :  { %v1323_v59 = vpop.f32.mrf.mxu1  ;;  %v1284_v36 = vadd.f32 %v1283_v58, %v1282_v56 }
  0xef   :  { %v1285_v60 = vpop.f32.mrf.mxu0 }
  0xf0   :  { %v1937_v61 = vpop.f32.mrf.mxu1  ;;  %v849_v44 = vadd.f32 %v1284_v36, %v1151_v35 }
  0xf1   :  { %v1286_v62 = vpop.f32.mrf.mxu0 }
  0xf2   :  { %v1939_v63 = vpop.f32.mrf.mxu1  ;;  %v1287_v45 = vadd.f32 %v1286_v62, %v1285_v60 }
  0xf3   :  { %v1288_v0 = vpop.f32.mrf.mxu0 }
  0xf4   :  { %v1941_v1 = vpop.f32.mrf.mxu1  ;;  %v852_v62 = vadd.f32 %v1287_v45, %v1151_v35 }
  0xf5   :  { %v1289_v2 = vpop.f32.mrf.mxu0 }
  0xf6   :  { %v1329_v3 = vpop.f32.mrf.mxu1  ;;  %v1290_v42 = vadd.f32 %v1289_v2, %v1288_v0  ;;  %v1321_v2 = vadd.f32 %v1935_v55, %v1933_v53 }
  0xf7   :  { %v1291_v4 = vpop.f32.mrf.mxu0  ;;  %v1330_v51 = vadd.f32 %v1329_v3, %v1941_v1 }
  0xf8   :  { %v1943_v5 = vpop.f32.mrf.mxu1 }
  0xf9   :  { %v1292_v6 = vpop.f32.mrf.mxu0 }
  0xfa   :  { %v1945_v7 = vpop.f32.mrf.mxu1 }
  0xfb   :  { %v1294_v8 = vpop.f32.mrf.mxu0 }
  0xfc   :  { %v1334_v9 = vpop.f32.mrf.mxu1 }
  0xfd   :  { %v1295_v10 = vpop.f32.mrf.mxu0 }
  0xfe   :  { %v1335_v11 = vpop.f32.mrf.mxu1  ;;  %v1296_v38 = vadd.f32 %v1295_v10, %v1294_v8  ;;  %v905_v8 = vadd.f32 %v1318_v47, %v841_v41  ;;  %v857_v10 = vadd.f32 %v1290_v42, %v1151_v35 }
  0xff   :  { %v1297_v12 = vpop.f32.mrf.mxu0 }
 0x100   :  { %v1337_v13 = vpop.f32.mrf.mxu1  ;;  %v865_v48 = vadd.f32 %v1296_v38, %v1151_v35  ;;  %v1281_v12 = vadd.f32 %v1280_v54, %v1931_v52 }
 0x101   :  { %v1298_v14 = vpop.f32.mrf.mxu0  ;;  %v1324_v13 = vadd.f32 %v1323_v59, %v1322_v57  ;;  %v1327_v59 = vadd.f32 %v1939_v63, %v1937_v61 }
 0x102   :  { %v1338_v15 = vpop.f32.mrf.mxu1  ;;  %v1293_v14 = vadd.f32 %v1292_v6, %v1291_v4  ;;  %v844_v57 = vadd.f32 %v1281_v12, %v1151_v35 }
 0x103   :  { %v1356_v16 = vpop.f32.mrf.mxu0  ;;  %v1336_v15 = vadd.f32 %v1335_v11, %v1334_v9  ;;  %v913_v60 = vadd.f32 %v1324_v13, %v849_v44  ;;  %v921_v11 = vadd.f32 %v1330_v51, %v857_v10 }
 0x104   :  { %v1947_v17 = vpop.f32.mrf.mxu1  ;;  %v908_v63 = vadd.f32 %v1321_v2, %v844_v57 }
 0x105   :  { %v1357_v18 = vpop.f32.mrf.mxu0  ;;  %v929_v36 = vadd.f32 %v1336_v15, %v865_v48 }
 0x106   :  { %v1949_v19 = vpop.f32.mrf.mxu1  ;;  %v1358_v33 = vadd.f32 %v1357_v18, %v1356_v16  ;;  %v916_v16 = vadd.f32 %v1327_v59, %v852_v62  ;;  %v1127_v62 = vld [vmem:[%s2028_s3 + $0x8] sm:$0xff] }
 0x107   :  { %v1359_v20 = vpop.f32.mrf.mxu0 }
 0x108   :  { %v1951_v21 = vpop.f32.mrf.mxu1  ;;  %v969_v18 = vadd.f32 %v1358_v33, %v905_v8 }
 0x109   :  { %v1360_v22 = vpop.f32.mrf.mxu0 }
 0x10a   :  { %v1953_v23 = vpop.f32.mrf.mxu1  ;;  %v1361_v41 = vadd.f32 %v1360_v22, %v1359_v20  ;;  %v1128_v20 = vld [vmem:[%s2028_s3 + $0x10] sm:$0xff] }
 0x10b   :  { %v1362_v24 = vpop.f32.mrf.mxu0  ;;  %v1401_v12 = vadd.f32 %v1953_v23, %v1951_v21 }
 0x10c   :  { %v1402_v25 = vpop.f32.mrf.mxu1  ;;  %v972_v22 = vadd.f32 %v1361_v41, %v908_v63 }
 0x10d   :  { %v1363_v26 = vpop.f32.mrf.mxu0 }
 0x10e   :  { %v1403_v27 = vpop.f32.mrf.mxu1  ;;  %v1364_v56 = vadd.f32 %v1363_v26, %v1362_v24  ;;  %v860_v24 = vadd.f32 %v1293_v14, %v1151_v35 }
 0x10f   :  { %v1365_v28 = vpop.f32.mrf.mxu0  ;;  %v1404_v1 = vadd.f32 %v1403_v27, %v1402_v25  ;;  %v1132_v27 = vld [vmem:[%s2028_s3 + $0x30] sm:$0xff] }
 0x110   :  { %v1955_v29 = vpop.f32.mrf.mxu1  ;;  %v977_v4 = vadd.f32 %v1364_v56, %v913_v60  ;;  %v1130_v56 = vld [vmem:[%s2028_s3 + $0x20] sm:$0xff]  ;;  %v1036_v60 = vadd.f32 %v1401_v12, %v972_v22 }
 0x111   :  { %v1366_v30 = vpop.f32.mrf.mxu0 }
 0x112   :  { %v1957_v31 = vpop.f32.mrf.mxu1  ;;  %v1367_v6 = vadd.f32 %v1366_v30, %v1365_v28  ;;  %v1398_v28 = vadd.f32 %v1949_v19, %v1947_v17  ;;  %v1041_v35 = vadd.f32 %v1404_v1, %v977_v4 }
 0x113   :  { %v1368_v32 = vpop.f32.mrf.mxu0 }
 0x114   :  { %v1408_v34 = vpop.f32.mrf.mxu1  ;;  %v980_v30 = vadd.f32 %v1367_v6, %v916_v16  ;;  %v1033_v17 = vadd.f32 %v1398_v28, %v969_v18 }
 0x115   :  { %v1369_v37 = vpop.f32.mrf.mxu0 }
 0x116   :  { %v1409_v39 = vpop.f32.mrf.mxu1  ;;  %v1370_v38 = vadd.f32 %v1369_v37, %v1368_v32  ;;  %v1333_v32 = vadd.f32 %v1945_v7, %v1943_v5  ;;  %v1407_v5 = vadd.f32 %v1957_v31, %v1955_v29 }
 0x117   :  { %v1371_v40 = vpop.f32.mrf.mxu0  ;;  %v1410_v47 = vadd.f32 %v1409_v39, %v1408_v34  ;;  %v1126_v34 = vld [vmem:[%s2028_s3] sm:$0xff] }
 0x118   :  { %v1962_v43 = vpop.f32.mrf.mxu1  ;;  %v985_v37 = vadd.f32 %v1370_v38, %v921_v11  ;;  %v924_v45 = vadd.f32 %v1333_v32, %v860_v24  ;;  %v1131_v38 = vld [vmem:[%s2028_s3 + $0x28] sm:$0xff] }
 0x119   :  { %v1372_v46 = vpop.f32.mrf.mxu0 }
 0x11a   :  { %v1965_v50 = vpop.f32.mrf.mxu1  ;;  %v1373_v42 = vadd.f32 %v1372_v46, %v1371_v40  ;;  %v1049_v39 = vadd.f32 %v1410_v47, %v985_v37 }
 0x11b   :  { %v1374_v58 = vpop.f32.mrf.mxu0  ;;  %v1413_v8 = vadd.f32 %v1965_v50, %v1962_v43 }
 0x11c   :  { %v1414_v0 = vpop.f32.mrf.mxu1  ;;  %v988_v19 = vadd.f32 %v1373_v42, %v924_v45 }
 0x11d   :  { %v1375_v49 = vpop.f32.mrf.mxu0 }
 0x11e   :  { %v1376_v52 = vadd.f32 %v1375_v49, %v1374_v58  ;;  %v1415_v54 = vpop.f32.mrf.mxu1  ;;  %v1044_v58 = vadd.f32 %v1407_v5, %v980_v30  ;;  %v1052_v33 = vadd.f32 %v1413_v8, %v988_v19 }
 0x11f   :  { %v1377_v9 = vpop.f32.mrf.mxu0  ;;  %v1416_v55 = vadd.f32 %v1415_v54, %v1414_v0  ;;  %v1129_v0 = vld [vmem:[%s2028_s3 + $0x18] sm:$0xff] }
 0x120   :  { %v993_v53 = vadd.f32 %v1376_v52, %v929_v36  ;;  %v1417_v26 = vpop.f32.mrf.mxu1 }
 0x121   :  { %v1378_v3 = vpop.f32.mrf.mxu0 }
 0x122   :  { %v1418_v44 = vpop.f32.mrf.mxu1  ;;  %v1057_v61 = vadd.f32 %v1416_v55, %v993_v53 }
 0x124   :  { %v1450_v48 = vpop.f32.mrf.mxu0 }
 0x125   :  { %v1105_v7 = vadd.f32 %v1450_v48, %v1041_v35  ;;  %v1454_v25 = vpop.f32.mrf.mxu1 }
 0x126   :  { %v1121_v40 = vadd.f32 %v1454_v25, %v1057_v61  ;;  %v1096_v46 = vpop.f32.mrf.mxu0 }
 0x127   :  { %v1135_v13 = vadd.f32 %v1128_v20, %v1105_v7  ;;  %v1097_v29 = vadd.f32 %v1096_v46, %v1033_v17  ;;  %v1112_v31 = vpop.f32.mrf.mxu1 }
 0x128   :  { %v1139_v10 = vadd.f32 %v1132_v27, %v1121_v40  ;;  %v1113_v14 = vadd.f32 %v1112_v31, %v1049_v39  ;;  %v1451_v15 = vpop.f32.mrf.mxu0 }
 0x129   :  { %1142 = vst [vmem:[%s2029_s4 + $0x10] sm:$0xff] %v1135_v13  ;;  %v1133_v21 = vadd.f32 %v1126_v34, %v1097_v29  ;;  %v1108_v23 = vadd.f32 %v1451_v15, %v1044_v58  ;;  %v1455_v2 = vpop.f32.mrf.mxu1 }
 0x12a   :  { %1146 = vst [vmem:[%s2029_s4 + $0x30] sm:$0xff] %v1139_v10  ;;  %v1137_v43 = vadd.f32 %v1130_v56, %v1113_v14  ;;  %v1099_v50 = vpop.f32.mrf.mxu0 }
 0x12b   :  { %1140 = vst [vmem:[%s2029_s4] sm:$0xff] %v1133_v21  ;;  %v1136_v49 = vadd.f32 %v1129_v0, %v1108_v23  ;;  %v1100_v51 = vadd.f32 %v1099_v50, %v1036_v60  ;;  %v1115_v36 = vpop.f32.mrf.mxu1 }
 0x12c   :  { %1144 = vst [vmem:[%s2029_s4 + $0x20] sm:$0xff] %v1137_v43  ;;  %v1116_v52 = vadd.f32 %v1115_v36, %v1052_v33 }
 0x12d   :  { %1143 = vst [vmem:[%s2029_s4 + $0x18] sm:$0xff] %v1136_v49  ;;  %v1134_v54 = vadd.f32 %v1127_v62, %v1100_v51 }
 0x12e   :  { %v1138_v57 = vadd.f32 %v1131_v38, %v1116_v52 }
 0x12f   :  { %1141 = vst [vmem:[%s2029_s4 + $0x8] sm:$0xff] %v1134_v54 }
 0x130   :  { %1145 = vst [vmem:[%s2029_s4 + $0x28] sm:$0xff] %v1138_v57 }

</bundles_post_ra>
